<compile_context>
chip_gen: v5e
topology: v5e:2x2
jax: 0.10.0
libtpu: 0.0.40
codegen_flags: <defaults>
</compile_context>

<pallas_src>
import math

import jax
import jax.numpy as jnp
from jax.experimental import pallas as pl
from jax.experimental.pallas import tpu as pltpu


# --------------------------------------------------------------------------
# Small helpers.
# --------------------------------------------------------------------------
def _round_up(x, m):
    return (x + m - 1) // m * m


def _sublane_pack(dtype):
    """Rows sharing one 32-bit sublane row: 8 (f32), 16 (bf16), 32 (int8/fp8)."""
    return max(8, 32 // max(1, jnp.dtype(dtype).itemsize))


def _vmem_config():
    """Per-generation (per-buffer padded-byte target, vmem_limit_bytes)."""
    try:
        cap = pltpu.get_tpu_info().vmem_capacity_bytes
    except Exception:               # unknown part / query unavailable
        return 2 << 20, None        # modest blocks, keep default scoped limit
    if cap >= (96 << 20):           # v5e / v6e: 128 MiB physical VMEM
        return 4 << 20, 48 << 20
    if cap >= (48 << 20):           # v7x: 64 MiB per TensorCore
        return 2 << 20, 32 << 20
    return 1 << 20, min(12 << 20, cap * 3 // 4)   # small-VMEM parts


def _sorted_grid(axes):
    """axes = [(name, n_blocks), ...]; largest extent first so the leading
    'parallel' axis is always big (v7x megacore). Returns (grid, map_factory)."""
    order = sorted(range(len(axes)), key=lambda i: -axes[i][1])
    grid = tuple(axes[i][1] for i in order)
    pos = {axes[i][0]: j for j, i in enumerate(order)}

    def map_for(logical_order):
        def index_map(*g):
            return tuple(g[pos[name]] for name in logical_order)
        return index_map

    return grid, map_for


def _compiler_params(grid, vmem_limit):
    return pltpu.CompilerParams(
        dimension_semantics=("parallel",) * len(grid),
        vmem_limit_bytes=vmem_limit)


def _cost(nbytes):
    # Pure bandwidth op: read everything once, write everything once.
    return pl.CostEstimate(flops=0, transcendentals=0, bytes_accessed=2 * nbytes)


# --------------------------------------------------------------------------
# Lane-dense merged path (M == 1):  (B, C, H*W) -> (B, H, C*W).
# --------------------------------------------------------------------------
def _pick_merged_blocks(C, H, W, dtype, per_buf):
    it = jnp.dtype(dtype).itemsize
    sub = _sublane_pack(dtype)
    # bc*W and bh*W must be multiples of 128 (lane-dense DMA) unless the block
    # covers the full dim; bc/bh must also be sublane-pack aligned.
    align = math.lcm(sub, 128 // math.gcd(W, 128))

    def padded(bc, bh):                       # (8,128)-padded VMEM footprint
        p_in = _round_up(bc, sub) * _round_up(bh * W, 128) * it
        p_out = _round_up(bh, sub) * _round_up(bc * W, 128) * it
        return p_in + p_out

    bc = C if C <= align else (C // align) * align
    bh = H if H <= align else (H // align) * align
    while padded(bc, bh) > 2 * per_buf:
        if bh > align and (bh >= bc or bc <= align):
            bh = max(align, (bh // 2) // align * align)
        elif bc > align:
            bc = max(align, (bc // 2) // align * align)
        else:
            return None                       # cannot tile further -> direct path
    return bc, bh


def _make_merged_kernel(bc, bh, W):
    if W == 1:
        def kernel(x_ref, o_ref):             # (bc, bh) -> (bh, bc): XLU transpose
            o_ref[...] = x_ref[...].T
    else:
        def kernel(x_ref, o_ref):
            # lane-dense load, on-chip interleave, lane-dense store
            x = x_ref[...].reshape(bc, bh, W)
            y = jnp.transpose(x, (1, 0, 2))   # (bh, bc, W)
            o_ref[...] = y.reshape(bh, bc * W)
    return kernel


def _transpose_merged(x3, B, C, H, W, per_buf, vmem_limit):
    dtype = x3.dtype
    blocks = _pick_merged_blocks(C, H, W, dtype, per_buf)
    if blocks is None:
        return None
    bc, bh = blocks
    grid, map_for = _sorted_grid(
        [("b", B), ("h", pl.cdiv(H, bh)), ("c", pl.cdiv(C, bc))])
    return pl.pallas_call(
        _make_merged_kernel(bc, bh, W),
        out_shape=jax.ShapeDtypeStruct((B, H, C * W), dtype),
        grid=grid,
        in_specs=[pl.BlockSpec((pl.Squeezed(), bc, bh * W),
                               map_for(("b", "c", "h")))],
        out_specs=pl.BlockSpec((pl.Squeezed(), bh, bc * W),
                               map_for(("b", "h", "c"))),
        compiler_params=_compiler_params(grid, vmem_limit),
        cost_estimate=_cost(x3.size * dtype.itemsize),
    )(x3)


# --------------------------------------------------------------------------
# Direct blocked path:  (B, C, M, H, W) -> (B, H, M, C, W).
# --------------------------------------------------------------------------
def _pick_direct_blocks(C, H, W, dtype, per_buf):
    it = jnp.dtype(dtype).itemsize
    sub = _sublane_pack(dtype)
    bw = W if W <= 256 else min((W // 128) * 128, 1024)

    def padded(bc, bh, bw):
        p_in = bc * _round_up(bh, sub) * _round_up(bw, 128) * it
        p_out = bh * _round_up(bc, sub) * _round_up(bw, 128) * it
        return p_in + p_out

    bc = C if C <= sub else (C // sub) * sub
    bh = H if H <= sub else (H // sub) * sub
    while padded(bc, bh, bw) > 2 * per_buf:
        if bh > sub and (bh >= bc or bc <= sub):
            bh = max(sub, (bh // 2) // sub * sub)
        elif bc > sub:
            bc = max(sub, (bc // 2) // sub * sub)
        elif bw > 128:
            bw = max(128, (bw // 2) // 128 * 128)
        else:
            break                              # smallest legal block
    return bc, bh, bw


def _direct_kernel(x_ref, o_ref):
    # (bc, bh, bw) -> (bh, bc, bw); lane dim untouched.
    o_ref[...] = jnp.transpose(x_ref[...], (1, 0, 2))


def _transpose_direct(x5, per_buf, vmem_limit):
    B, C, M, H, W = x5.shape
    dtype = x5.dtype
    bc, bh, bw = _pick_direct_blocks(C, H, W, dtype, per_buf)
    grid, map_for = _sorted_grid(
        [("b", B), ("m", M), ("h", pl.cdiv(H, bh)),
         ("c", pl.cdiv(C, bc)), ("w", pl.cdiv(W, bw))])
    return pl.pallas_call(
        _direct_kernel,
        out_shape=jax.ShapeDtypeStruct((B, H, M, C, W), dtype),
        grid=grid,
        in_specs=[pl.BlockSpec((pl.Squeezed(), bc, pl.Squeezed(), bh, bw),
                               map_for(("b", "c", "m", "h", "w")))],
        out_specs=pl.BlockSpec((pl.Squeezed(), bh, pl.Squeezed(), bc, bw),
                               map_for(("b", "h", "m", "c", "w"))),
        compiler_params=_compiler_params(grid, vmem_limit),
        cost_estimate=_cost(x5.size * dtype.itemsize),
    )(x5)


# --------------------------------------------------------------------------
# Public entry point.
# --------------------------------------------------------------------------
def transpose_pallas(x, dim1, dim2):
    """Pallas equivalent of torch.Tensor.transpose(dim1, dim2)."""
    ndim = x.ndim
    dim1 %= ndim
    dim2 %= ndim
    if dim1 == dim2:
        return x

    perm = list(range(ndim))
    perm[dim1], perm[dim2] = perm[dim2], perm[dim1]
    perm = tuple(perm)
    out_shape = tuple(x.shape[p] for p in perm)

    if x.size == 0:                         # nothing to move
        return jnp.transpose(x, perm)

    d1, d2 = sorted((dim1, dim2))
    shape = x.shape
    B = math.prod(shape[:d1])               # untouched leading dims
    C = shape[d1]
    M = math.prod(shape[d1 + 1:d2])         # untouched middle dims
    H = shape[d2]
    W = math.prod(shape[d2 + 1:])           # untouched trailing (contiguous) dims

    per_buf, vmem_limit = _vmem_config()

    if M == 1:
        y = _transpose_merged(x.reshape(B, C, H * W), B, C, H, W,
                              per_buf, vmem_limit)
        if y is not None:
            return y.reshape(out_shape)
    y = _transpose_direct(x.reshape(B, C, M, H, W), per_buf, vmem_limit)
    return y.reshape(out_shape)


class Transpose:
    """JAX/Pallas mirror of the PyTorch Transpose nn.Module."""

    def __init__(self, dim1, dim2):
        self.dim1 = dim1
        self.dim2 = dim2

    def __call__(self, x):
        return transpose_pallas(x, self.dim1, self.dim2)


if __name__ == "__main__":
    key = jax.random.PRNGKey(0)
    k1, k2, k3 = jax.random.split(key, 3)

    # NCHW input, OANet-style Transpose(1, 2): lane-dense merged path (W = 16).
    x = jax.random.normal(k1, (2, 4, 16, 16), dtype=jnp.float32)
    out = jax.block_until_ready(Transpose(1, 2)(x))
    ref = jnp.transpose(x, (0, 2, 1, 3))
    assert out.shape == (2, 16, 4, 16), out.shape
    assert out.dtype == x.dtype
    assert jnp.array_equal(out, ref), "Pallas 4-D transpose mismatch"

    # OANet-style (B, C, N) input, Transpose(1, 2): W == 1 -> 2-D XLU path.
    x3 = jax.random.normal(k2, (2, 32, 128), dtype=jnp.float32)
    out3 = jax.block_until_ready(Transpose(1, 2)(x3))
    ref3 = jnp.transpose(x3, (0, 2, 1))
    assert out3.shape == (2, 128, 32), out3.shape
    assert jnp.array_equal(out3, ref3), "Pallas 2-D transpose mismatch"

    # Non-adjacent swap (M > 1): exercises the direct blocked 5-D path.
    x5 = jax.random.normal(k3, (2, 8, 3, 16, 8), dtype=jnp.float32)
    out5 = jax.block_until_ready(Transpose(1, 3)(x5))
    ref5 = jnp.transpose(x5, (0, 3, 2, 1, 4))
    assert out5.shape == (2, 16, 3, 8, 8), out5.shape
    assert jnp.array_equal(out5, ref5), "Pallas 5-D transpose mismatch"

    print("KERNEL_OK")
</pallas_src>

<mosaic_0001>
module attributes {stable_mosaic.version = 11 : i64} {
  func.func @kernel(%arg0: i32, %arg1: i32, %arg2: i32, %arg3: memref<1x4x256xf32, #tpu.memory_space<vmem>>, %arg4: memref<1x16x64xf32, #tpu.memory_space<vmem>>) attributes {dimension_semantics = [#tpu.dimension_semantics<parallel>, #tpu.dimension_semantics<parallel>, #tpu.dimension_semantics<parallel>], iteration_bounds = array<i64: 2, 1, 1>, scalar_prefetch = 0 : i64, scratch_operands = 0 : i64, tpu.core_type = #tpu.core_type<tc>, window_params = [{transform_indices = @transform_0, window_bounds = array<i64: 1, 4, 256>}, {transform_indices = @transform_1, window_bounds = array<i64: 1, 16, 64>}]} {
    %c0 = arith.constant 0 : index
    %c0_0 = arith.constant 0 : index
    %c0_1 = arith.constant 0 : index
    %0 = vector.load %arg3[%c0, %c0_0, %c0_1] : memref<1x4x256xf32, #tpu.memory_space<vmem>>, vector<1x4x256xf32>
    %1 = vector.shape_cast %0 : vector<1x4x256xf32> to vector<4x256xf32>
    %2 = vector.shape_cast %1 : vector<4x256xf32> to vector<4x16x16xf32>
    %3 = tpu.transpose %2, [1, 0, 2] : vector<4x16x16xf32> -> vector<16x4x16xf32>
    %4 = vector.shape_cast %3 : vector<16x4x16xf32> to vector<16x64xf32>
    %c0_2 = arith.constant 0 : index
    %c0_3 = arith.constant 0 : index
    %c0_4 = arith.constant 0 : index
    %5 = vector.load %arg4[%c0_2, %c0_3, %c0_4] : memref<1x16x64xf32, #tpu.memory_space<vmem>>, vector<1x16x64xf32>
    %6 = vector.shape_cast %5 : vector<1x16x64xf32> to vector<16x64xf32>
    %7 = vector.shape_cast %4 : vector<16x64xf32> to vector<1x16x64xf32>
    tpu.vector_store %arg4[%c0_2, %c0_3, %c0_4], %7 {strides = array<i32>} : memref<1x16x64xf32, #tpu.memory_space<vmem>>, vector<1x16x64xf32>,
    return
  }
  func.func @transform_0(%arg0: i32, %arg1: i32, %arg2: i32) -> (i32, i32, i32) {
    %c0_i32 = arith.constant 0 : i32
    return %arg0, %arg2, %arg1 : i32, i32, i32
  }
  func.func @transform_1(%arg0: i32, %arg1: i32, %arg2: i32) -> (i32, i32, i32) {
    %c0_i32 = arith.constant 0 : i32
    return %arg0, %arg1, %arg2 : i32, i32, i32
  }
}

</mosaic_0001>

<bundles_post_ra>
// kernel: tpu_custom_call.1
= control target key start
LH: loop header
LB: loop body
LE: loop exit
PB: predicated region body
PF: predicated region fallthrough
CT: control target
= control target key end

     0   :  { %6 = vsyncpa [#allocation3], 0  ;;  %s1242_s0 = inlined_call_operand.hbm [shape: f32[2,4,256], index: 0, kind: input, shape index: {}]   ;;  %s1243_s1 = inlined_call_operand.hbm [shape: f32[2,16,64], index: 1, kind: output, shape index: {}]  }
   0x1   :  { %8 = vsyncpa [#allocation3 + $0x1], 0 }
   0x2   :  { %9 = vsyncpa [#allocation4], 0 }
   0x3   :  { %11 = vsyncpa [#allocation4 + $0x1], 0  ;;  %s961_s6 = smov 0   ;;  %s963_s7 = smov 0  }
   0x4   :  { %s965_s8 = smov 0   ;;  %s967_s9 = smov 0  }
   0x5   :  { %s969_s10 = smov 0   ;;  %s971_s11 = smov 0  }
   0x6 LB: > { %s732_s12 = sadd.s32 4294967295, %s938_s11   ;;  %s733_s13 = sadd.s32 4294967294, %s938_s11   ;;  %s938_s11 = sphi %s971_s11, %s17_s11   ;;  %s934_s10 = sphi %s969_s10, %s1252_s10   ;;  %s930_s9 = sphi %s967_s9, %s1251_s9   ;;  %s926_s8 = sphi %s965_s8, %s1250_s8   ;;  %s922_s7 = sphi %s963_s7, %s1249_s7   ;;  %s918_s6 = sphi %s961_s6, %s1248_s6  }
   0x7   : > { %s36_s14 = sadd.s32 1, %s934_s10  ;;  %s47_s15 = sadd.s32 1, %s926_s8 }
   0x8   : > { %p38_p0 = scmp.ge.s32.totalorder %s36_s14, 2  ;;  %p54_p1 = scmp.ne.s32.totalorder %s926_s8, %s922_s7 }
   0x9   : > { %p55_p2 = scmp.eq.s32.totalorder %s938_s11, 0  ;;  %p60_p3 = scmp.ne.s32.totalorder %s922_s7, %s918_s6 }
   0xa   : > { %s1254_s14 = smov (%p38_p0, %s36_s14), 0  ;;  %p61_p5 = scmp.eq.s32.totalorder %s732_s12, 0 }
   0xb   : > { %p1002_p4 = por %p55_p2, %p54_p1  ;;  %s40_s17 = ssub.s32 %s934_s10, %s1254_s14 }
   0xc   : > { %p88_p6 = scmp.eq.s32.totalorder %s732_s12, 1  ;;  %p45_p7 = scmp.eq.s32.totalorder %s40_s17, 0 }
   0xd   : > { %p1008_p8 = por %p61_p5, %p60_p3  ;;  %p94_p10 = scmp.eq.s32.totalorder %s733_s13, 1 }
   0xe   : > { %p1012_p9 = por %p88_p6, %p54_p1  ;;  %p735_p12 = scmp.ge.s32.totalorder %s938_s11, 2 }
   0xf   : > { %s1017_s20 = scalar_select %p45_p7, %s926_s8, %s47_s15  }
  0x10   : > { %p1019_p11 = por %p94_p10, %p60_p3  ;;  %p765_p13 = scmp.lt.s32.totalorder %s938_s11, 2 }
  0x11   : > { %s114_s22 = sand.u32 1, %s926_s8   ;;  %s751_s24 = sshll.u32 %s934_s10, 3 }
  0x12   : > { %s736_s23 = sshll.u32 %s114_s22, 3  ;;  %s127_s27 = scalar_lea.hbm %s1242_s0, %s751_s24 }
  0x13   : > { %s118_s28 = scalar_lea.vmem [#allocation2], %s736_s23  ;;  %s129_s30 = sshll.u32 %s127_s27, 4  ;;  %s130_s30 = int_to_ptr.hbm [resolvable:$true] %s129_s30 }
  0x14   : > { %s131_s29 = sshll.u32 %s118_s28, 4  ;;  %p758_p0 = pnand %p765_p13, %p1002_p4  ;;  %s132_s29 = int_to_ptr.vmem [resolvable:$true] %s131_s29 }
  0x15   : > { %p739_p1 = scmp.ge.s32.totalorder %s938_s11, 1  ;;  %p136_p2 = scmp.lt.s32.totalorder %s938_s11, 3 }
  0x16   : > { %s115_s2 = scalar_lea.sflag [#allocation3], %s114_s22 }
  0x17   : > { %760 = dma.hbm_to_vmem [thread:$0]  (!%p758_p0), %s130_s30, 128, %s132_s29, %s115_s2  }
  0x18   : > { %p137_p3 = pnand %p739_p1, %p136_p2 }
  0x19   : > { %s1035_s3 = sand.u32 (!%p137_p3), 1, %s922_s7  }
  0x1a   : > { %140 = sbr.rel (%p137_p3) target bundleno = 360 (0x168), region = 24  ;;  %s740_s4 = sshll.u32 (!%p137_p3), %s1035_s3, 3 }
  0x1b   : > { %s143_s5 = scalar_lea.sflag (!%p137_p3), [#allocation3], %s1035_s3  ;;  %s146_s12 = scalar_lea.vmem (!%p137_p3), [#allocation2], %s740_s4 }
  0x1f   : > { %909 = dma.done.wait (%p1008_p8), %s143_s5, 128  }
  0x20   : > { %911 = vsyncadd (%p1008_p8), %s143_s5, 4294967168  ;;  %v168_v0 = vld [vmem:[%s146_s12] sm:$0xff]  ;;  %s940_s13 = smov 32   ;;  %s941_s15 = smov 96   ;;  %v947_v1 = vmov 1983009808  }
  0x21   : > { %192 = vrot.lane.b32.xlu1 %v168_v0, %s940_s13  ;;  %176 = vrot.lane.b32.xlu0 %v168_v0, %s941_s15  ;;  %s942_s16 = smov 80   ;;  %s943_s17 = smov 112   ;;  %v211_v2 = vunpack.c.l.s4 %v947_v1  ;;  %v170_v5 = vrot.slane %v168_v0, 4  ;;  %vm208_vm0 = vcmask 1047556   ;;  %v948_v13 = vmov 1934713408  }
  0x22   : > { %180 = vrot.lane.b32.xlu2 %v168_v0, %s942_s16  ;;  %s944_s22 = smov 64   ;;  %s945_s23 = smov 48   ;;  %v225_v14 = vunpack.c.l.s4 %v948_v13  ;;  %vm611_vm1 = vcmask 261120   ;;  %vm608_vm2 = vcmask 130048   ;;  %vm614_vm3 = vcmask 392192  }
  0x23   : > { %s946_s24 = smov 16   ;;  %v1046_v8 = vunpack.c.0.s8 %v211_v2  ;;  %s741_s18 = sshll.u32 %s1035_s3, 4  ;;  %vm617_vm4 = vcmask 523264  }
  0x24   : > { %v1052_v19 = vunpack.c.0.s8 %v225_v14  ;;  %s165_s25 = scalar_lea.vmem [#allocation5], %s741_s18  ;;  %s752_s26 = sshll.u32 %s930_s9, 4 }
  0x25   : > { %s635_s29 = scalar_lea.hbm %s1243_s1, %s752_s26  ;;  %s636_s30 = sshll.u32 %s165_s25, 4  ;;  %s637_s30 = int_to_ptr.vmem [resolvable:$true] %s636_s30 }
  0x26   : > { %s638_s2 = sshll.u32 %s635_s29, 4  ;;  %s621_s9 = scalar_lea.sflag [#allocation4], %s1035_s3  ;;  %s639_s2 = int_to_ptr.hbm [resolvable:$true] %s638_s2 }
  0x27   : > { %s870_s4 = sshra.s32 %s639_s2, 4  ;;  %s876_s15 = scalar_lea.hbm %s1243_s1, 32  ;;  %s871_s4 = int_to_ptr.hbm [resolvable:$true] %s870_s4 }
  0x28   : > { %s872_s5 = scalar_lea.hbm %s871_s4, 16  ;;  %p877_p7 = scmp.lt.s32.totalorder %s871_s4, %s1243_s1 }
  0x29   : > { %172 = vrot.lane.b32.xlu1 %v168_v0, %s943_s17  ;;  %184 = vrot.lane.b32.xlu0 %v168_v0, %s944_s22  ;;  %p873_p4 = scmp.ne.s32.totalorder %s871_s4, %s872_s5  ;;  %p878_p8 = scmp.lt.s32.totalorder %s876_s15, %s872_s5 }
  0x2a   : > { %188 = vrot.lane.b32.xlu2 %v168_v0, %s945_s23 }
  0x2b   : > { %p874_p5 = pnand %p873_p4, %p1012_p9  ;;  %p879_p10 = por %p878_p8, %p877_p7 }
  0x2d   : > { %p875_p6 = pneg %p874_p5 }
  0x2f   : > { %p880_p13 = pnand %p879_p10, %p875_p6 }
  0x31   : > { %196 = vrot.lane.b32.xlu0 %v168_v0, %s946_s24 }
  0x7c   : > { %v181_v7 = vpop.permute.xlu2 %180 }
  0x7d   : > { %v214_v12 = vrot.slane %v181_v7, 4 }
  0x84   : > { %v189_v28 = vpop.permute.xlu2 %188 }
  0x85   : > { %v190_v37 = vrot.slane %v189_v28, 4 }
  0x93   : > { %v193_v3 = vpop.permute.xlu1 %192  ;;  %v177_v4 = vpop.permute.xlu0 %176 }
  0x94   : > { %v207_v6 = vrot.slane %v177_v4, 4  ;;  %v265_v10 = vsel %vm208_vm0, %v177_v4, %v170_v5  ;;  %v236_v11 = vrot.slane %v193_v3, 4 }
  0x95   : > { %v269_v16 = vperm.slane %v265_v10, %v1046_v8 }
  0x96   : > { %v209_v9 = vsel %vm208_vm0, %v207_v6, %v168_v0 }
  0x97   : > { %v213_v15 = vperm.slane %v209_v9, %v1046_v8  ;;  %v278_v25 = vrot.slane %v269_v16, 4 }
  0x99   : > { %v222_v23 = vrot.slane %v213_v15, 4 }
  0x9b   : > { %v173_v17 = vpop.permute.xlu1 %172  ;;  %v185_v18 = vpop.permute.xlu0 %184 }
  0x9c   : > { %v174_v20 = vrot.slane %v173_v17, 4  ;;  %v215_v21 = vsel %vm208_vm0, %v214_v12, %v173_v17  ;;  %v237_v22 = vsel %vm208_vm0, %v236_v11, %v185_v18  ;;  %v186_v27 = vrot.slane %v185_v18, 4 }
  0x9d   : > { %v219_v24 = vperm.slane %v215_v21, %v1046_v8  ;;  %v241_v32 = vperm.slane %v237_v22, %v1046_v8 }
  0x9e   : > { %v271_v26 = vsel %vm208_vm0, %v181_v7, %v174_v20  ;;  %v293_v43 = vsel %vm208_vm0, %v193_v3, %v186_v27 }
  0x9f   : > { %v220_v29 = vrot.slane %v219_v24, 4  ;;  %v223_v30 = vsel %vm208_vm0, %v219_v24, %v222_v23  ;;  %v275_v31 = vperm.slane %v271_v26, %v1046_v8  ;;  %v250_v42 = vrot.slane %v241_v32, 4 }
  0xa0   : > { %v231_v33 = vperm.slane %v223_v30, %v1052_v19  ;;  %v297_v2 = vperm.slane %v293_v43, %v1046_v8 }
  0xa1   : > { %v221_v34 = vsel %vm208_vm0, %v220_v29, %v213_v15  ;;  %v276_v35 = vrot.slane %v275_v31, 4  ;;  %v279_v36 = vsel %vm208_vm0, %v275_v31, %v278_v25 }
  0xa2   : > { %v227_v38 = vperm.slane %v221_v34, %v1052_v19  ;;  %v234_v39 = vrot.slane %v231_v33, 4  ;;  %v287_v40 = vperm.slane %v279_v36, %v1052_v19  ;;  %v306_v31 = vrot.slane %v297_v2, 4 }
  0xa3   : > { %v277_v41 = vsel %vm208_vm0, %v276_v35, %v269_v16  ;;  %v197_v44 = vpop.permute.xlu0 %196 }
  0xa4   : > { %v232_v45 = vrot.slane %v227_v38, 4  ;;  %v235_v46 = vsel %vm208_vm0, 0.0, %v234_v39  ;;  %v283_v47 = vperm.slane %v277_v41, %v1052_v19  ;;  %v290_v48 = vrot.slane %v287_v40, 4 }
  0xa5   : > { %v320_v49 = vsel %vm208_vm0, %v234_v39, %v227_v38  ;;  %v325_v50 = vrot.slane %v235_v46, 4  ;;  %v242_v51 = vrot.slane %v197_v44, 4  ;;  %v299_v52 = vsel %vm208_vm0, %v197_v44, %v190_v37 }
  0xa6   : > { %v233_v53 = vsel %vm208_vm0, 0.0, %v232_v45  ;;  %v288_v54 = vrot.slane %v283_v47, 4  ;;  %v291_v55 = vsel %vm208_vm0, 0.0, %v290_v48  ;;  %v324_v56 = vperm.slane %v320_v49, %v1046_v8 }
  0xa7   : > { %v326_v57 = vsel %vm208_vm0, %v325_v50, %v233_v53  ;;  %v374_v58 = vsel %vm208_vm0, %v290_v48, %v283_v47  ;;  %v379_v59 = vrot.slane %v291_v55, 4  ;;  %v243_v60 = vsel %vm208_vm0, %v242_v51, %v189_v28 }
  0xa8   : > { %v289_v61 = vsel %vm208_vm0, 0.0, %v288_v54  ;;  %v330_v62 = vperm.slane %v326_v57, %v1046_v8  ;;  %v333_v63 = vrot.slane %v324_v56, 4  ;;  %v378_v0 = vperm.slane %v374_v58, %v1046_v8 }
  0xa9   : > { %v380_v1 = vsel %vm208_vm0, %v379_v59, %v289_v61  ;;  %v247_v3 = vperm.slane %v243_v60, %v1046_v8  ;;  %v303_v4 = vperm.slane %v299_v52, %v1046_v8 }
  0xaa   : > { %v331_v5 = vrot.slane %v330_v62, 4  ;;  %v334_v6 = vsel %vm208_vm0, %v330_v62, %v333_v63  ;;  %v384_v7 = vperm.slane %v380_v1, %v1046_v8  ;;  %v387_v9 = vrot.slane %v378_v0, 4 }
  0xab   : > { %v342_v10 = vperm.slane %v334_v6, %v1052_v19  ;;  %v248_v11 = vrot.slane %v247_v3, 4  ;;  %v251_v12 = vsel %vm208_vm0, %v247_v3, %v250_v42  ;;  %v304_v13 = vrot.slane %v303_v4, 4 }
  0xac   : > { %v332_v14 = vsel %vm208_vm0, %v331_v5, %v324_v56  ;;  %v385_v15 = vrot.slane %v384_v7, 4  ;;  %v388_v16 = vsel %vm208_vm0, %v384_v7, %v387_v9  ;;  %v259_v17 = vperm.slane %v251_v12, %v1052_v19 }
  0xad   : > { %v338_v18 = vperm.slane %v332_v14, %v1052_v19  ;;  %v345_v20 = vrot.slane %v342_v10, 4  ;;  %v396_v21 = vperm.slane %v388_v16, %v1052_v19  ;;  %v249_v22 = vsel %vm208_vm0, %v248_v11, %v241_v32 }
  0xae   : > { %v386_v23 = vsel %vm208_vm0, %v385_v15, %v378_v0  ;;  %v255_v24 = vperm.slane %v249_v22, %v1052_v19  ;;  %v262_v25 = vrot.slane %v259_v17, 4  ;;  %v305_v32 = vsel %vm208_vm0, %v304_v13, %v297_v2 }
  0xaf   : > { %v343_v26 = vrot.slane %v338_v18, 4  ;;  %v346_v27 = vsel %vm208_vm0, 0.0, %v345_v20  ;;  %v392_v28 = vperm.slane %v386_v23, %v1052_v19  ;;  %v399_v29 = vrot.slane %v396_v21, 4 }
  0xb0   : > { %v433_v30 = vrot.slane %v346_v27, 4  ;;  %v260_v33 = vrot.slane %v255_v24, 4  ;;  %v428_v37 = vsel %vm208_vm0, %v345_v20, %v338_v18  ;;  %v263_v40 = vsel %vm208_vm0, 0.0, %v262_v25 }
  0xb1   : > { %v344_v34 = vsel %vm208_vm0, 0.0, %v343_v26  ;;  %v397_v35 = vrot.slane %v392_v28, 4  ;;  %v400_v36 = vsel %vm208_vm0, 0.0, %v399_v29  ;;  %v307_v44 = vsel %vm208_vm0, %v303_v4, %v306_v31 }
  0xb2   : > { %v434_v38 = vsel %vm208_vm0, %v433_v30, %v344_v34  ;;  %v487_v39 = vrot.slane %v400_v36, 4  ;;  %v261_v43 = vsel %vm208_vm0, 0.0, %v260_v33  ;;  %v311_v46 = vperm.slane %v305_v32, %v1052_v19 }
  0xb3   : > { %v398_v41 = vsel %vm208_vm0, 0.0, %v397_v35  ;;  %v1107_v42 = vperm.slane %v434_v38, %v1046_v8  ;;  %v315_v47 = vperm.slane %v307_v44, %v1052_v19  ;;  %v347_v48 = vsel %vm208_vm0, %v262_v25, %v255_v24 }
  0xb4   : > { %v488_v45 = vsel %vm208_vm0, %v487_v39, %v398_v41  ;;  %v1116_v49 = vperm.slane %v428_v37, %v1046_v8  ;;  %v351_v51 = vperm.slane %v347_v48, %v1046_v8  ;;  %v352_v52 = vrot.slane %v263_v40, 4 }
  0xb5   : > { %v439_v50 = vrot.slane %v1107_v42, 4  ;;  %v482_v53 = vsel %vm208_vm0, %v399_v29, %v392_v28  ;;  %v316_v54 = vrot.slane %v311_v46, 4  ;;  %v318_v55 = vrot.slane %v315_v47, 4 }
  0xb6   : > { %v1122_v56 = vperm.slane %v488_v45, %v1046_v8  ;;  %v353_v57 = vsel %vm208_vm0, %v352_v52, %v261_v43  ;;  %v360_v58 = vrot.slane %v351_v51, 4  ;;  %v1133_v2 = vperm.slane %v482_v53, %v1046_v8 }
  0xb7   : > { %v440_v59 = vsel %vm208_vm0, %v439_v50, %v1116_v49  ;;  %v317_v60 = vsel %vm208_vm0, 0.0, %v316_v54  ;;  %v319_v61 = vsel %vm208_vm0, 0.0, %v318_v55  ;;  %v357_v62 = vperm.slane %v353_v57, %v1046_v8 }
  0xb8   : > { %v401_v63 = vsel %vm208_vm0, %v318_v55, %v311_v46  ;;  %v406_v1 = vrot.slane %v319_v61, 4  ;;  %v493_v3 = vrot.slane %v1122_v56, 4  ;;  %v446_v6 = vperm.slane %v440_v59, %v1052_v19 }
  0xb9   : > { %v405_v0 = vperm.slane %v401_v63, %v1046_v8  ;;  %v358_v4 = vrot.slane %v357_v62, 4  ;;  %v361_v5 = vsel %vm208_vm0, %v357_v62, %v360_v58  ;;  %v441_v53 = vrot.slane %v1116_v49, 4 }
  0xba   : > { %v369_v7 = vperm.slane %v361_v5, %v1052_v19  ;;  %v407_v9 = vsel %vm208_vm0, %v406_v1, %v317_v60  ;;  %v494_v11 = vsel %vm208_vm0, %v493_v3, %v1133_v2  ;;  %540 = vst [vmem:[#allocation1] ss:$2 sm:$0xff] %v446_v6  ;;  %v451_v47 = vrot.slane %v446_v6, 4 }
  0xbb   : > { %v414_v10 = vrot.slane %v405_v0, 4  ;;  %v359_v12 = vsel %vm208_vm0, %v358_v4, %v351_v51  ;;  %v411_v13 = vperm.slane %v407_v9, %v1046_v8  ;;  %v500_v14 = vperm.slane %v494_v11, %v1052_v19 }
  0xbc   : > { %v365_v15 = vperm.slane %v359_v12, %v1052_v19  ;;  %v372_v16 = vrot.slane %v369_v7, 4  ;;  %v452_v51 = vsel %vm208_vm0, 0.0, %v451_v47  ;;  %v495_v59 = vrot.slane %v1133_v2, 4 }
  0xbd   : > { %v412_v17 = vrot.slane %v411_v13, 4  ;;  %v415_v18 = vsel %vm208_vm0, %v411_v13, %v414_v10  ;;  %544 = vst [vmem:[#allocation1 + $0x10] ss:$2 sm:$0xff] %v500_v14  ;;  %v505_v50 = vrot.slane %v500_v14, 4  ;;  %v442_v61 = vsel %vm208_vm0, %v1107_v42, %v441_v53 }
  0xbe   : > { %v370_v20 = vrot.slane %v365_v15, 4  ;;  %v373_v21 = vsel %vm208_vm0, 0.0, %v372_v16  ;;  %v423_v22 = vperm.slane %v415_v18, %v1052_v19  ;;  %v455_v28 = vsel %vm208_vm0, %v372_v16, %v365_v15 }
  0xbf   : > { %v413_v23 = vsel %vm208_vm0, %v412_v17, %v405_v0  ;;  %v460_v24 = vrot.slane %v373_v21, 4  ;;  %v459_v36 = vperm.slane %v455_v28, %v1046_v8  ;;  %v506_v57 = vsel %vm208_vm0, 0.0, %v505_v50 }
  0xc0   : > { %v371_v25 = vsel %vm208_vm0, 0.0, %v370_v20  ;;  %v419_v26 = vperm.slane %v413_v23, %v1052_v19  ;;  %v426_v27 = vrot.slane %v423_v22, 4  ;;  %v450_v63 = vperm.slane %v442_v61, %v1052_v19 }
  0xc1   : > { %v461_v29 = vsel %vm208_vm0, %v460_v24, %v371_v25  ;;  %v496_v0 = vsel %vm208_vm0, %v1122_v56, %v495_v59 }
  0xc2   : > { %v424_v30 = vrot.slane %v419_v26, 4  ;;  %v427_v31 = vsel %vm208_vm0, 0.0, %v426_v27  ;;  %v465_v33 = vperm.slane %v461_v29, %v1046_v8  ;;  %v509_v37 = vsel %vm208_vm0, %v426_v27, %v419_v26 }
  0xc3   : > { %v514_v34 = vrot.slane %v427_v31, 4  ;;  %v513_v43 = vperm.slane %v509_v37, %v1046_v8  ;;  %v504_v42 = vperm.slane %v496_v0, %v1052_v19  ;;  %v453_v6 = vrot.slane %v450_v63, 4 }
  0xc4   : > { %v425_v35 = vsel %vm208_vm0, 0.0, %v424_v30  ;;  %v466_v32 = vrot.slane %v465_v33, 4 }
  0xc5   : > { %v515_v38 = vsel %vm208_vm0, %v514_v34, %v425_v35  ;;  %v522_v62 = vrot.slane %v513_v43, 4  ;;  %v454_v7 = vsel %vm208_vm0, 0.0, %v453_v6  ;;  %v507_v10 = vrot.slane %v504_v42, 4 }
  0xc6   : > { %v519_v39 = vperm.slane %v515_v38, %v1046_v8  ;;  %v467_v40 = vsel %vm208_vm0, %v466_v32, %v459_v36  ;;  %v468_v8 = vrot.slane %v459_v36, 4 }
  0xc7   : > { %v473_v41 = vperm.slane %v467_v40, %v1052_v19 }
  0xc8   : > { %v520_v44 = vrot.slane %v519_v39, 4  ;;  %v469_v49 = vsel %vm208_vm0, %v465_v33, %v468_v8  ;;  %v523_v2 = vsel %vm208_vm0, %v519_v39, %v522_v62 }
  0xc9   : > { %542 = vst [vmem:[#allocation1 + $0x1] ss:$2 sm:$0xff] %v473_v41  ;;  %v478_v48 = vrot.slane %v473_v41, 4  ;;  %v477_v1 = vperm.slane %v469_v49, %v1052_v19  ;;  %v531_v4 = vperm.slane %v523_v2, %v1052_v19 }
  0xca   : > { %v521_v45 = vsel %vm208_vm0, %v520_v44, %v513_v43 }
  0xcb   : > { %v527_v46 = vperm.slane %v521_v45, %v1052_v19  ;;  %v479_v55 = vsel %vm208_vm0, 0.0, %v478_v48  ;;  %v480_v56 = vrot.slane %v477_v1, 4  ;;  %v534_v12 = vrot.slane %v531_v4, 4 }
  0xcc   : > { %v508_v19 = vsel %vm208_vm0, 0.0, %v507_v10 }
  0xcd   : > { %546 = vst [vmem:[#allocation1 + $0x11] ss:$2 sm:$0xff] %v527_v46  ;;  %v532_v54 = vrot.slane %v527_v46, 4  ;;  %v481_v11 = vsel %vm208_vm0, 0.0, %v480_v56  ;;  %v535_v14 = vsel %vm208_vm0, 0.0, %v534_v12 }
  0xcf   : > { %v533_v60 = vsel %vm208_vm0, 0.0, %v532_v54 }
  0xd0   : > { %v547_v52 = vld.sshfl [vmem:[#allocation1] sm:$0xff pattern:$0x75316420] }
  0xd1   : > { %555 = vst [vmem:[#allocation1] ss:$2 sm:$0xff] %v452_v51 }
  0xd2   : > { %557 = vst [vmem:[#allocation1 + $0x1] ss:$2 sm:$0xff] %v479_v55 }
  0xd4   : > { %v1170_v58 = vld.sshfl [vmem:[#allocation1 + $0x10] sm:$0xff pattern:$0x75316420] }
  0xd5   : > { %559 = vst [vmem:[#allocation1 + $0x10] ss:$2 sm:$0xff] %v506_v57 }
  0xd6   : > { %561 = vst [vmem:[#allocation1 + $0x11] ss:$2 sm:$0xff] %v533_v60 }
  0xd9   : > { %v562_v3 = vld.sshfl [vmem:[#allocation1] sm:$0xff pattern:$0x75316420] }
  0xda   : > { %564 = vrot.lane.b32.xlu1 %v562_v3, %s946_s24  ;;  %574 = vst [vmem:[#allocation1] ss:$2 sm:$0xff] %v450_v63 }
  0xdb   : > { %576 = vst [vmem:[#allocation1 + $0x1] ss:$2 sm:$0xff] %v477_v1 }
  0xdd   : > { %v563_v5 = vld.sshfl [vmem:[#allocation1 + $0x10] sm:$0xff pattern:$0x75316420] }
  0xde   : > { %566 = vrot.lane.b32.xlu2 %v563_v5, %s946_s24  ;;  %578 = vst [vmem:[#allocation1 + $0x10] ss:$2 sm:$0xff] %v504_v42 }
  0xdf   : > { %580 = vst [vmem:[#allocation1 + $0x11] ss:$2 sm:$0xff] %v531_v4 }
  0xe2   : > { %v581_v9 = vld.sshfl [vmem:[#allocation1] sm:$0xff pattern:$0x75316420] }
  0xe3   : > { %583 = vrot.lane.b32.xlu0 %v581_v9, %s940_s13  ;;  %593 = vst [vmem:[#allocation1] ss:$2 sm:$0xff] %v454_v7 }
  0xe4   : > { %595 = vst [vmem:[#allocation1 + $0x1] ss:$2 sm:$0xff] %v481_v11 }
  0xe6   : > { %v582_v13 = vld.sshfl [vmem:[#allocation1 + $0x10] sm:$0xff pattern:$0x75316420] }
  0xe7   : > { %585 = vrot.lane.b32.xlu1 %v582_v13, %s940_s13  ;;  %597 = vst [vmem:[#allocation1 + $0x10] ss:$2 sm:$0xff] %v508_v19 }
  0xe8   : > { %599 = vst [vmem:[#allocation1 + $0x11] ss:$2 sm:$0xff] %v535_v14 }
  0xeb   : > { %v600_v15 = vld.sshfl [vmem:[#allocation1] sm:$0xff pattern:$0x75316420] }
  0xec   : > { %602 = vrot.lane.b32.xlu2 %v600_v15, %s945_s23 }
  0xef   : > { %v601_v16 = vld.sshfl [vmem:[#allocation1 + $0x10] sm:$0xff pattern:$0x75316420] }
  0xf0   : > { %604 = vrot.lane.b32.xlu0 %v601_v16, %s945_s23 }
 0x138   : > { %v567_v17 = vpop.permute.xlu2 %566 }
 0x139   : > { %v610_v26 = vsel %vm608_vm2, %v1170_v58, %v567_v17 }
 0x146   : > { %v603_v22 = vpop.permute.xlu2 %602 }
 0x14c   : > { %v565_v18 = vpop.permute.xlu1 %564 }
 0x14d   : > { %v609_v20 = vsel %vm608_vm2, %v547_v52, %v565_v18 }
 0x155   : > { %v584_v21 = vpop.permute.xlu0 %583 }
 0x156   : > { %v612_v23 = vsel %vm611_vm1, %v609_v20, %v584_v21 }
 0x157   : > { %v615_v24 = vsel %vm614_vm3, %v612_v23, %v603_v22 }
 0x158   : > { %618 = vst.msk [vmem:[%s165_s25] sm:$0xff] %vm617_vm4, %v615_v24 }
 0x159   : > { %v586_v25 = vpop.permute.xlu1 %585 }
 0x15a   : > { %v613_v27 = vsel %vm611_vm1, %v610_v26, %v586_v25 }
 0x162   : > { %v605_v28 = vpop.permute.xlu0 %604 }
 0x163   : > { %v616_v29 = vsel %vm614_vm3, %v613_v27, %v605_v28 }
 0x164   : > { %619 = vst.msk [vmem:[%s165_s25 + $0x8] sm:$0xff] %vm617_vm4, %v616_v29 }
 0x165   : > { %883 = shalt.err (!%p880_p13)
}
 0x166   : > { %s949_s3 = smov 128   ;;  %s950_s22 = smov 8  }
 0x167   : > { %755 = dma.vmem_to_hbm [thread:$0]  (%p1012_p9), %s637_s30, 256, %s639_s2, %s621_s9, %s949_s3, %s949_s3, %s950_s22  }
 0x168 PF: > { %s653_s23 = sand.u32 1, %s918_s6   ;;  %p762_p0 = pnand %p735_p12, %p1019_p11 }
 0x169   : > { %s654_s24 = scalar_lea.sflag [#allocation4], %s653_s23 }
 0x16a   : > { %p763_p1 = pneg %p762_p0 }
 0x16c   : > { %913 = dma.done.wait (%p763_p1), %s654_s24, 256  }
 0x16d   : > { %915 = vsyncadd (%p763_p1), %s654_s24, 4294967040  ;;  %s17_s11 = sadd.s32 1, %s938_s11   ;;  %s1248_s6 = smov %s922_s7 }
 0x16e   : > { %p14_p2 = scmp.ge.s32.totalorder %s17_s11, 4   ;;  %s1249_s7 = smov %s926_s8 }
 0x16f   : > { %s1250_s8 = smov %s1017_s20  ;;  %s1251_s9 = smov %s934_s10 }
 0x170   : > { %s1252_s10 = smov %s1254_s14  ;;  %16 = sbr.rel (!%p14_p2) target bundleno = 6 (0x6), region = 81 }
 0x175   :  { %660 = vsyncpa [#allocation3], 1 }
 0x176   :  { %662 = vsyncpa [#allocation3 + $0x1], 1 }
 0x177   :  { %663 = vsyncpa [#allocation4], 1 }
 0x178   :  { %665 = vsyncpa [#allocation4 + $0x1], 1 }

</bundles_post_ra>
